<compile_context>
chip_gen: v5e
topology: v5e:2x2
jax: 0.10.0
libtpu: 0.0.40
codegen_flags: <defaults>
</compile_context>

<pallas_src>
import functools

import jax
import jax.numpy as jnp
from jax.experimental import pallas as pl
from jax.experimental.pallas import tpu as pltpu

LANE = 128  # vreg lane width; weight slabs are packed to (128, 128)


def _round_up(n, m):
    return (n + m - 1) // m * m


def _choose_tile(B, tile_b):
    """Pick a batch tile: multiple of 8, <= requested, and (when possible)
    small enough that the grid has >=2 steps so v7x's two TensorCores both work."""
    b8 = _round_up(B, 8)
    tile = min(tile_b, b8)
    if b8 >= 16:
        tile = min(tile, _round_up((b8 + 1) // 2, 8))
    return _round_up(tile, 8)


def actor_kernel(x_ref, w1_ref, w2_ref, out_ref, xpad_ref, *, n_states, n_actions):
    # ---- Widen the natural-width x tile (tile_b, n_states) to 128 lanes ----
    # Scratch roundtrip gives a (tile_b, 128) value; a select clears stale padded
    # lanes and injects the constant-1 bias lane at column n_states.
    xpad_ref[:, :n_states] = x_ref[...]
    xv = xpad_ref[...]
    lane = jax.lax.broadcasted_iota(jnp.int32, xv.shape, 1)
    xv = jnp.where(lane == n_states, 1.0, jnp.where(lane < n_states, xv, 0.0))

    # ---- Layer 1: (tile_b,128) @ (128,128) on the MXU; b1 folded into W1 ----
    h = jnp.dot(xv, w1_ref[...], preferred_element_type=jnp.float32)
    h = jnp.maximum(h, 0.0)  # ReLU; padded hidden lanes stay 0, "ones" lane stays 1

    # ---- Layer 2: (tile_b,128) @ (128,128); b2 folded into W2.  The packed W2
    # bias row drives padded action lanes to -1e30, so no explicit masking here.
    logits = jnp.dot(h, w2_ref[...], preferred_element_type=jnp.float32)

    # Numerically-stable softmax over the action axis (torch dim=1).
    m = jnp.max(logits, axis=-1, keepdims=True)
    e = jnp.exp(logits - m)          # padded lanes: exp(-1e30 - m) == 0.0
    denom = jnp.sum(e, axis=-1, keepdims=True)
    probs = e / denom                # exact normalization (rows sum to 1)

    # Store only the useful action lanes -> lane-thin (tile_b, n_actions) output.
    out_ref[...] = probs[:, :n_actions].astype(out_ref.dtype)


def pack_actor_params(w1, b1, w2, b2):
    """Fold biases (and padded-action masking) into (128,128) weight slabs.

    w1: (n_states, hidden), b1: (1, hidden), w2: (hidden, n_actions), b2: (1, n_actions)
    (weights stored as (in_features, out_features), i.e. transposed vs. PyTorch).
    """
    n_states, hidden = w1.shape
    _, n_actions = w2.shape
    assert n_states + 1 <= LANE and hidden + 1 <= LANE and n_actions <= LANE

    W1 = jnp.zeros((LANE, LANE), jnp.float32)
    W1 = W1.at[:n_states, :hidden].set(w1.astype(jnp.float32))
    W1 = W1.at[n_states, :hidden].set(b1.reshape(-1).astype(jnp.float32))  # bias via ones lane
    W1 = W1.at[n_states, hidden].set(1.0)  # h[:, hidden] == ReLU(1) == 1 -> layer-2 bias lane

    W2 = jnp.zeros((LANE, LANE), jnp.float32)
    W2 = W2.at[:hidden, :n_actions].set(w2.astype(jnp.float32))
    W2 = W2.at[hidden, :n_actions].set(b2.reshape(-1).astype(jnp.float32))
    W2 = W2.at[hidden, n_actions:].set(-1e30)  # mask padded logit lanes via bias row
    return W1, W2


def actor_forward(x, w1_pad, w2_pad, n_actions, *, tile_b=1024):
    """x: (B, n_states); w1_pad/w2_pad: (128,128) packed slabs -> (B, n_actions) probs."""
    B, n_states = x.shape
    tile = _choose_tile(B, tile_b)
    B_pad = _round_up(B, tile)

    x_in = x.astype(jnp.float32)
    if B_pad != B:  # tiny row pad only (natural width), not a 128-lane slab
        x_in = jnp.pad(x_in, ((0, B_pad - B), (0, 0)))

    grid = (B_pad // tile,)
    out = pl.pallas_call(
        functools.partial(actor_kernel, n_states=n_states, n_actions=n_actions),
        out_shape=jax.ShapeDtypeStruct((B_pad, n_actions), jnp.float32),
        grid_spec=pltpu.PrefetchScalarGridSpec(
            num_scalar_prefetch=0,
            grid=grid,
            in_specs=[
                # natural-width x tile (last dim == full array dim -> allowed)
                pl.BlockSpec((tile, n_states), lambda i: (i, 0)),
                pl.BlockSpec((LANE, LANE), lambda i: (0, 0)),  # W1 (resident)
                pl.BlockSpec((LANE, LANE), lambda i: (0, 0)),  # W2 (resident)
            ],
            # lane-thin output: only the useful action columns are written back
            out_specs=pl.BlockSpec((tile, n_actions), lambda i: (i, 0)),
            scratch_shapes=[pltpu.VMEM((tile, LANE), jnp.float32)],
        ),
        compiler_params=pltpu.CompilerParams(
            dimension_semantics=("parallel",)),  # shard batch tiles across TCs (v7x)
    )(x_in, w1_pad, w2_pad)

    if B_pad != B:
        out = out[:B]
    return out


def init_actor_params(key, n_states, n_actions, hidden=24):
    """Deterministic init mimicking torch.nn.Linear default:
    U(-1/sqrt(fan_in), 1/sqrt(fan_in)) for both weight and bias."""
    k1, k2, k3, k4 = jax.random.split(key, 4)
    bound1 = 1.0 / jnp.sqrt(float(n_states))
    bound2 = 1.0 / jnp.sqrt(float(hidden))
    w1 = jax.random.uniform(k1, (n_states, hidden), jnp.float32, -bound1, bound1)
    b1 = jax.random.uniform(k2, (1, hidden), jnp.float32, -bound1, bound1)
    w2 = jax.random.uniform(k3, (hidden, n_actions), jnp.float32, -bound2, bound2)
    b2 = jax.random.uniform(k4, (1, n_actions), jnp.float32, -bound2, bound2)
    return w1, b1, w2, b2


def _reference(x, w1, b1, w2, b2):
    h = jnp.maximum(x @ w1 + b1, 0.0)
    return jax.nn.softmax(h @ w2 + b2, axis=1)


if __name__ == "__main__":
    key = jax.random.PRNGKey(0)
    k_x, k_x2, k_p = jax.random.split(key, 3)

    n_states = 4      # CartPole-like state
    n_actions = 2

    w1, b1, w2, b2 = init_actor_params(k_p, n_states, n_actions)
    W1_pad, W2_pad = pack_actor_params(w1, b1, w2, b2)

    # ---- small batch (single 8-row tile) ----
    x = jax.random.normal(k_x, (8, n_states), dtype=jnp.float32)
    out = jax.block_until_ready(actor_forward(x, W1_pad, W2_pad, n_actions))
    ref = _reference(x, w1, b1, w2, b2)
    assert out.shape == (8, n_actions)
    assert jnp.allclose(out, ref, atol=1e-3, rtol=1e-3)
    assert jnp.allclose(jnp.sum(out, axis=1), 1.0, atol=1e-4)  # exact normalization

    # ---- larger batch exercising the gridded / row-padded path (grid >= 2) ----
    x2 = jax.random.normal(k_x2, (200, n_states), dtype=jnp.float32)
    out2 = jax.block_until_ready(actor_forward(x2, W1_pad, W2_pad, n_actions))
    ref2 = _reference(x2, w1, b1, w2, b2)
    assert out2.shape == (200, n_actions)
    assert jnp.allclose(out2, ref2, atol=1e-3, rtol=1e-3)
    assert jnp.allclose(jnp.sum(out2, axis=1), 1.0, atol=1e-4)

    print("KERNEL_OK")
</pallas_src>

<mosaic_0001>
module attributes {stable_mosaic.version = 11 : i64} {
  func.func @actor_kernel(%arg0: i32, %arg1: memref<8x4xf32, #tpu.memory_space<vmem>>, %arg2: memref<128x128xf32, #tpu.memory_space<vmem>>, %arg3: memref<128x128xf32, #tpu.memory_space<vmem>>, %arg4: memref<8x2xf32, #tpu.memory_space<vmem>>, %arg5: memref<8x128xf32, #tpu.memory_space<vmem>>) attributes {dimension_semantics = [#tpu.dimension_semantics<parallel>], iteration_bounds = array<i64: 1>, scalar_prefetch = 0 : i64, scratch_operands = 1 : i64, tpu.core_type = #tpu.core_type<tc>, window_params = [{transform_indices = @transform_0, window_bounds = array<i64: 8, 4>}, {pipeline_mode = #tpu.pipeline_mode<synchronous>, transform_indices = @transform_1, window_bounds = array<i64: 128, 128>}, {pipeline_mode = #tpu.pipeline_mode<synchronous>, transform_indices = @transform_2, window_bounds = array<i64: 128, 128>}, {transform_indices = @transform_3, window_bounds = array<i64: 8, 2>}]} {
    %c0 = arith.constant 0 : index
    %c0_0 = arith.constant 0 : index
    %0 = vector.load %arg1[%c0, %c0_0] : memref<8x4xf32, #tpu.memory_space<vmem>>, vector<8x4xf32>
    %c0_1 = arith.constant 0 : index
    %c0_2 = arith.constant 0 : index
    %1 = vector.load %arg5[%c0_1, %c0_2] : memref<8x128xf32, #tpu.memory_space<vmem>>, vector<8x4xf32>
    tpu.vector_store %arg5[%c0_1, %c0_2], %0 {strides = array<i32>} : memref<8x128xf32, #tpu.memory_space<vmem>>, vector<8x4xf32>,
    %c0_3 = arith.constant 0 : index
    %c0_4 = arith.constant 0 : index
    %2 = vector.load %arg5[%c0_3, %c0_4] : memref<8x128xf32, #tpu.memory_space<vmem>>, vector<8x128xf32>
    %3 = tpu.iota {dimensions = array<i32: 1>} : vector<8x128xi32>
    %c4_i32 = arith.constant 4 : i32
    %4 = vector.broadcast %c4_i32 : i32 to vector<8x128xi32>
    %5 = arith.cmpi eq, %3, %4 : vector<8x128xi32>
    %c4_i32_5 = arith.constant 4 : i32
    %6 = vector.broadcast %c4_i32_5 : i32 to vector<8x128xi32>
    %7 = arith.cmpi slt, %3, %6 : vector<8x128xi32>
    %cst = arith.constant 0.000000e+00 : f32
    %8 = vector.broadcast %cst : f32 to vector<8x128xf32>
    %9 = arith.select %7, %2, %8 : vector<8x128xi1>, vector<8x128xf32>
    %cst_6 = arith.constant 1.000000e+00 : f32
    %10 = vector.broadcast %cst_6 : f32 to vector<8x128xf32>
    %11 = arith.select %5, %10, %9 : vector<8x128xi1>, vector<8x128xf32>
    %c0_7 = arith.constant 0 : index
    %c0_8 = arith.constant 0 : index
    %12 = vector.load %arg2[%c0_7, %c0_8] : memref<128x128xf32, #tpu.memory_space<vmem>>, vector<128x128xf32>
    %cst_9 = arith.constant dense<0.000000e+00> : vector<8x128xf32>
    %13 = tpu.matmul %11, %12, %cst_9 {dimension_numbers = #tpu.dot_dimension_numbers<[1], [0], [0], [1], [0, 0, 1, 1], [], []>} : vector<8x128xf32>, vector<128x128xf32>, vector<8x128xf32> -> vector<8x128xf32>
    %cst_10 = arith.constant 0.000000e+00 : f32
    %14 = vector.broadcast %cst_10 : f32 to vector<8x128xf32>
    %15 = arith.maximumf %13, %14 : vector<8x128xf32>
    %c0_11 = arith.constant 0 : index
    %c0_12 = arith.constant 0 : index
    %16 = vector.load %arg3[%c0_11, %c0_12] : memref<128x128xf32, #tpu.memory_space<vmem>>, vector<128x128xf32>
    %cst_13 = arith.constant dense<0.000000e+00> : vector<8x128xf32>
    %17 = tpu.matmul %15, %16, %cst_13 {dimension_numbers = #tpu.dot_dimension_numbers<[1], [0], [0], [1], [0, 0, 1, 1], [], []>} : vector<8x128xf32>, vector<128x128xf32>, vector<8x128xf32> -> vector<8x128xf32>
    %cst_14 = arith.constant dense<0xFF800000> : vector<8xf32>
    %18 = vector.multi_reduction <maximumf>, %17, %cst_14 [1] : vector<8x128xf32> to vector<8xf32>
    %19 = vector.shape_cast %18 : vector<8xf32> to vector<8x1xf32>
    %20 = vector.broadcast %19 : vector<8x1xf32> to vector<8x128xf32>
    %21 = arith.subf %17, %20 : vector<8x128xf32>
    %22 = math.exp %21 : vector<8x128xf32>
    %cst_15 = arith.constant dense<0.000000e+00> : vector<8xf32>
    %23 = vector.multi_reduction <add>, %22, %cst_15 [1] : vector<8x128xf32> to vector<8xf32>
    %24 = vector.shape_cast %23 : vector<8xf32> to vector<8x1xf32>
    %25 = vector.broadcast %24 : vector<8x1xf32> to vector<8x128xf32>
    %26 = arith.divf %22, %25 : vector<8x128xf32>
    %27 = vector.extract_strided_slice %26 {offsets = [0, 0], sizes = [8, 2], strides = [1, 1]} : vector<8x128xf32> to vector<8x2xf32>
    %c0_16 = arith.constant 0 : index
    %c0_17 = arith.constant 0 : index
    %28 = vector.load %arg4[%c0_16, %c0_17] : memref<8x2xf32, #tpu.memory_space<vmem>>, vector<8x2xf32>
    tpu.vector_store %arg4[%c0_16, %c0_17], %27 {strides = array<i32>} : memref<8x2xf32, #tpu.memory_space<vmem>>, vector<8x2xf32>,
    return
  }
  func.func @transform_0(%arg0: i32) -> (i32, i32) {
    %c0_i32 = arith.constant 0 : i32
    %c0_i32_0 = arith.constant 0 : i32
    return %arg0, %c0_i32 : i32, i32
  }
  func.func @transform_1(%arg0: i32) -> (i32, i32) {
    %c0_i32 = arith.constant 0 : i32
    %c0_i32_0 = arith.constant 0 : i32
    %c0_i32_1 = arith.constant 0 : i32
    return %c0_i32, %c0_i32_0 : i32, i32
  }
  func.func @transform_2(%arg0: i32) -> (i32, i32) {
    %c0_i32 = arith.constant 0 : i32
    %c0_i32_0 = arith.constant 0 : i32
    %c0_i32_1 = arith.constant 0 : i32
    return %c0_i32, %c0_i32_0 : i32, i32
  }
  func.func @transform_3(%arg0: i32) -> (i32, i32) {
    %c0_i32 = arith.constant 0 : i32
    %c0_i32_0 = arith.constant 0 : i32
    return %arg0, %c0_i32 : i32, i32
  }
}

</mosaic_0001>

<bundles_post_ra>
// kernel: tpu_custom_call.1
= control target key start
LH: loop header
LB: loop body
LE: loop exit
PB: predicated region body
PF: predicated region fallthrough
CT: control target
= control target key end

     0   :  { %8 = vsyncpa [#allocation4], 0  ;;  %s255_s0 = inlined_call_operand.vmem [shape: f32[8,4], index: 0, kind: input, shape index: {}]   ;;  %s256_s1 = inlined_call_operand.hbm [shape: f32[128,128], index: 1, kind: input, shape index: {}]   ;;  %s257_s2 = inlined_call_operand.hbm [shape: f32[128,128], index: 2, kind: input, shape index: {}]   ;;  %s258_s3 = inlined_call_operand.vmem [shape: f32[8,2], index: 3, kind: output, shape index: {}]  }
   0x1   :  { %s16_s14 = sshll.u32 %s256_s1, 4  ;;  %s17_s14 = int_to_ptr.hbm [resolvable:$true] %s16_s14 }
   0x2   :  { %9 = vsyncpa [#allocation6], 0  ;;  %s219_s15 = smov [#allocation3]   ;;  %s29_s19 = sshll.u32 %s257_s2, 4  ;;  %s30_s19 = int_to_ptr.hbm [resolvable:$true] %s29_s19 }
   0x3   :  { %s18_s16 = sshll.u32 %s219_s15, 4  ;;  %s220_s20 = smov 128   ;;  %s19_s16 = int_to_ptr.vmem [resolvable:$true] %s18_s16 }
   0x4   :  { %s221_s21 = smov 8   ;;  %s222_s22 = smov [#allocation5]  }
   0x5   :  { %24 = dma.hbm_to_vmem [thread:$0]  %s17_s14, 2048, %s19_s16, [#allocation4], %s220_s20, %s220_s20, %s221_s21  }
   0x6   :  { %s31_s23 = sshll.u32 %s222_s22, 4  ;;  %s32_s23 = int_to_ptr.vmem [resolvable:$true] %s31_s23 }
   0x7   :  { %37 = dma.hbm_to_vmem [thread:$0]  %s30_s19, 2048, %s32_s23, [#allocation6], %s220_s20, %s220_s20, %s221_s21  }
   0x8   :  { %215 = dma.done.wait [#allocation4], 2048  }
   0x9   :  { %216 = vsyncadd [#allocation4], 4294965248 }
   0xa   :  { %217 = dma.done.wait [#allocation6], 2048  }
   0xb   :  { %218 = vsyncadd [#allocation6], 4294965248  ;;  %v71_v0 = vld [vmem:[#allocation3 + $0x78] sm:$0xff]  ;;  %v70_v1 = vld [vmem:[#allocation3 + $0x70] sm:$0xff]  ;;  %vm47_vm0 = vcmask 31744   ;;  %v50_v16 = vlaneseq  ;;  %vm151_vm7 = vcmask 15360  }
   0xc   :  { %72 = vmatpush.msra.mxu0 %v71_v0  ;;  %v69_v2 = vld [vmem:[#allocation3 + $0x68] sm:$0xff]  ;;  %v68_v3 = vld [vmem:[#allocation3 + $0x60] sm:$0xff]  ;;  %v46_v4 = vld [vmem:[%s255_s0] sm:$0xff] }
   0xd   :  { %v108_v5 = vld [vmem:[#allocation5 + $0x78] sm:$0xff]  ;;  %48 = vst.msk [vmem:[#allocation2] sm:$0xff] %vm47_vm0, %v46_v4  ;;  %v107_v7 = vld [vmem:[#allocation5 + $0x70] sm:$0xff]  ;;  %v106_v8 = vld [vmem:[#allocation5 + $0x68] sm:$0xff]  ;;  %v51_v21 = vand.u32 127, %v50_v16 }
   0xe   :  { %73 = vmatpush.msra.mxu0 %v70_v1  ;;  %v67_v6 = vld [vmem:[#allocation3 + $0x58] sm:$0xff]  ;;  %109 = vmatpush.msra.mxu1 %v108_v5  ;;  %v66_v9 = vld [vmem:[#allocation3 + $0x50] sm:$0xff]  ;;  %v105_v10 = vld [vmem:[#allocation5 + $0x60] sm:$0xff] }
   0xf   :  { %v65_v11 = vld [vmem:[#allocation3 + $0x48] sm:$0xff]  ;;  %v104_v12 = vld [vmem:[#allocation5 + $0x58] sm:$0xff]  ;;  %v64_v13 = vld [vmem:[#allocation3 + $0x40] sm:$0xff]  ;;  %vm53_vm1 = vcmp.lt.s32.totalorder %v51_v21, 4  ;;  %vm52_vm2 = vcmp.eq.s32.totalorder %v51_v21, 4 }
  0x10   :  { %74 = vmatpush.msra.mxu0 %v69_v2  ;;  %110 = vmatpush.msra.mxu1 %v107_v7  ;;  %v103_v14 = vld [vmem:[#allocation5 + $0x50] sm:$0xff]  ;;  %v63_v15 = vld [vmem:[#allocation3 + $0x38] sm:$0xff]  ;;  %v102_v17 = vld [vmem:[#allocation5 + $0x48] sm:$0xff] }
  0x11   :  { %v62_v18 = vld [vmem:[#allocation3 + $0x30] sm:$0xff]  ;;  %v101_v19 = vld [vmem:[#allocation5 + $0x40] sm:$0xff]  ;;  %v61_v20 = vld [vmem:[#allocation3 + $0x28] sm:$0xff] }
  0x12   :  { %75 = vmatpush.msra.mxu0 %v68_v3  ;;  %111 = vmatpush.msra.mxu1 %v106_v8  ;;  %v100_v22 = vld [vmem:[#allocation5 + $0x38] sm:$0xff]  ;;  %v60_v23 = vld [vmem:[#allocation3 + $0x20] sm:$0xff]  ;;  %v99_v24 = vld [vmem:[#allocation5 + $0x30] sm:$0xff] }
  0x13   :  { %v59_v25 = vld [vmem:[#allocation3 + $0x18] sm:$0xff]  ;;  %v98_v27 = vld [vmem:[#allocation5 + $0x28] sm:$0xff]  ;;  %v58_v28 = vld [vmem:[#allocation3 + $0x10] sm:$0xff] }
  0x14   :  { %76 = vmatpush.msra.mxu0 %v67_v6  ;;  %112 = vmatpush.msra.mxu1 %v105_v10  ;;  %v49_v26 = vld [vmem:[#allocation2] sm:$0xff]  ;;  %v97_v29 = vld [vmem:[#allocation5 + $0x20] sm:$0xff]  ;;  %v57_v30 = vld [vmem:[#allocation3 + $0x8] sm:$0xff] }
  0x15   :  { %v54_v31 = vsel %vm53_vm1, %v49_v26, 0.0  ;;  %v96_v32 = vld [vmem:[#allocation5 + $0x18] sm:$0xff]  ;;  %v56_v33 = vld [vmem:[#allocation3] sm:$0xff]  ;;  %v95_v35 = vld [vmem:[#allocation5 + $0x10] sm:$0xff] }
  0x16   :  { %77 = vmatpush.msra.mxu0 %v66_v9  ;;  %113 = vmatpush.msra.mxu1 %v104_v12  ;;  %v55_v34 = vsel %vm52_vm2, 1.0, %v54_v31  ;;  %v94_v36 = vld [vmem:[#allocation5 + $0x8] sm:$0xff]  ;;  %v93_v37 = vld [vmem:[#allocation5] sm:$0xff] }
  0x18   :  { %78 = vmatpush.msra.mxu0 %v65_v11  ;;  %114 = vmatpush.msra.mxu1 %v103_v14 }
  0x1a   :  { %79 = vmatpush.msra.mxu0 %v64_v13  ;;  %115 = vmatpush.msra.mxu1 %v102_v17 }
  0x1c   :  { %80 = vmatpush.msra.mxu0 %v63_v15  ;;  %116 = vmatpush.msra.mxu1 %v101_v19 }
  0x1e   :  { %81 = vmatpush.msra.mxu0 %v62_v18  ;;  %117 = vmatpush.msra.mxu1 %v100_v22 }
  0x20   :  { %82 = vmatpush.msra.mxu0 %v61_v20  ;;  %118 = vmatpush.msra.mxu1 %v99_v24 }
  0x22   :  { %83 = vmatpush.msra.mxu0 %v60_v23  ;;  %119 = vmatpush.msra.mxu1 %v98_v27 }
  0x24   :  { %84 = vmatpush.msra.mxu0 %v59_v25  ;;  %120 = vmatpush.msra.mxu1 %v97_v29 }
  0x26   :  { %85 = vmatpush.msra.mxu0 %v58_v28  ;;  %121 = vmatpush.msra.mxu1 %v96_v32 }
  0x28   :  { %86 = vmatpush.msra.mxu0 %v57_v30  ;;  %122 = vmatpush.msra.mxu1 %v95_v35 }
  0x2a   :  { %87 = vmatpush.msra.mxu0 %v56_v33  ;;  %123 = vmatpush.msra.mxu1 %v94_v36 }
  0x2b   :  { %88 = vmatmul.f32.vlgmr.msra.gmra.mxu0 %v55_v34 }
  0x2c   :  { %124 = vmatpush.msra.mxu1 %v93_v37 }
  0xa8   :  { %v89_v38 = vpop.f32.mrf.mxu0 }
  0xa9   :  { %v92_v39 = vmax.f32 %v89_v38, 0.0 }
  0xab   :  { %125 = vmatmul.f32.vlgmr.msra.gmra.mxu1 %v92_v39 }
 0x128   :  { %v126_v40 = vpop.f32.mrf.mxu1 }
 0x129   :  { %129 = vmax.xlane.f32.xlu0 %v126_v40 }
 0x19c   :  { %v130_v41 = vpop.xlane.xlu0 %129 }
 0x19d   :  { %v131_v42 = vsub.f32 %v126_v40, %v130_v41 }
 0x19f   :  { %v132_v43 = vmul.f32 1.442695, %v131_v42 }
 0x1a1   :  { %163 = vpow2.f32 %v132_v43 }
 0x1a7   :  { %v164_v44 = vpop.eup %163 }
 0x1a8   :  { %134 = vadd.xlane.f32.xlu0 %v164_v44 }
 0x21b   :  { %v135_v45 = vpop.xlane.xlu0 %134 }
 0x21c   :  { %165 = vrcp.f32 %v135_v45  ;;  %v147_v49 = vand.u32 2147483648, %v135_v45  ;;  %v145_v51 = vand.u32 2147483647, %v135_v45  ;;  %vm141_vm4 = vweird.f32 %v135_v45 }
 0x21e   :  { %v148_v53 = vor.u32 1.1754944e-38, %v147_v49  ;;  %vm146_vm6 = vcmp.eq.f32.partialorder %v145_v51, 8.507059e+37 }
 0x222   :  { %v166_v46 = vpop.eup %165 }
 0x223   :  { %v137_v47 = vmul.f32 %v166_v46, %v135_v45  ;;  %vm142_vm3 = vweird.f32 %v166_v46 }
 0x224   :  { %vm143_vm5 = vmor %vm141_vm4, %vm142_vm3 }
 0x225   :  { %v138_v48 = vsub.f32 1.0, %v137_v47 }
 0x227   :  { %v139_v50 = vmul.f32 %v166_v46, %v138_v48 }
 0x229   :  { %v140_v52 = vadd.f32 %v166_v46, %v139_v50 }
 0x22b   :  { %v144_v54 = vsel %vm143_vm5, %v166_v46, %v140_v52 }
 0x22c   :  { %v149_v55 = vsel %vm146_vm6, %v148_v53, %v144_v54 }
 0x22d   :  { %v150_v56 = vmul.f32 %v164_v44, %v149_v55 }
 0x22f   :  { %152 = vst.msk [vmem:[%s258_s3] sm:$0xff] %vm151_vm7, %v150_v56 }
 0x230   :  { %157 = vsyncpa [#allocation4], 1 }
 0x231   :  { %158 = vsyncpa [#allocation6], 1 }

</bundles_post_ra>
